<compile_context>
chip_gen: v6e
topology: v6e:2x2x1
jax: 0.10.0
libtpu: 0.0.40
codegen_flags: <defaults>
</compile_context>

<pallas_src>
import functools

import jax
import jax.numpy as jnp
from jax.experimental import pallas as pl
from jax.experimental.pallas import tpu as pltpu


def _round_up(n, m):
    return ((n + m - 1) // m) * m


def _coupling_kernel(reverse, swap, nonlinearity, da, out_dim,
                     x_ref, lp_ref,
                     w1_ref, b1_ref, w2_ref, b2_ref, w3_ref, b3_ref,
                     out_ref):
    """One batch tile: MLP(x_a) -> (scale, shift), affine coupling, log-det.

    Output layout (lane axis):
      [:, :d]      -> y (already in the final, swap-aware column order)
      [:, d:d+1]   -> logpx +/- logdetjac
    """
    if nonlinearity == 'ReLu':
        act = lambda v: jnp.maximum(v, 0.0)
    else:  # 'Tanh'
        act = jnp.tanh

    d = da + out_dim
    x = x_ref[...]                                  # (TB, d) f32, original layout

    # The swap (torch.cat([x[:, da:], x[:, :da]], 1)) is a pure column permutation,
    # so we never materialize the swapped tensor: just read the right columns.
    if swap:
        xa_cols = [(k + da) % d for k in range(da)]   # conditioning columns
        xb_start = (2 * da) % d                       # transformed half is contiguous
    else:
        xa_cols = list(range(da))
        xb_start = da
    xb = x[:, xb_start:xb_start + out_dim]

    # Layer 1: contraction dim K = da (2-3) would be >97% padding on the MXU, so do
    # it as `da` broadcast multiply-adds on the VPU instead. Hidden dim is padded to a
    # lane-aligned size in the wrapper; padding is exact because act(0) == 0 and the
    # padded weight rows/cols are zero.
    h = b1_ref[...]                                  # (1, Hp), broadcasts over rows
    for k, src in enumerate(xa_cols):
        h = h + x[:, src:src + 1] * w1_ref[k:k + 1, :]
    h = act(h)

    # Layers 2 and 3 on the MXU: bf16 operands, f32 accumulation. The final Linear is
    # fused: one matmul producing [scale_logits | shift].
    h = act(jnp.dot(h.astype(jnp.bfloat16), w2_ref[...],
                    preferred_element_type=jnp.float32) + b2_ref[...])
    s_t = jnp.dot(h.astype(jnp.bfloat16), w3_ref[...],
                  preferred_element_type=jnp.float32) + b3_ref[...]

    scale = jax.nn.sigmoid(s_t[:, :out_dim]) + 0.01
    shift = s_t[:, out_dim:]
    logdetjac = jnp.sum(jnp.log(scale), axis=1, keepdims=True)

    if not reverse:
        y1 = xb * scale + shift
        lp_new = lp_ref[...] + logdetjac
    else:
        y1 = (xb - shift) / scale
        lp_new = lp_ref[...] - logdetjac

    # Packed output. The slab is only d+1 (<= ~8) lanes wide, so these few masked
    # sub-slice stores into the VMEM out-tile are negligible; HBM writeback is a
    # single block DMA regardless.
    if not swap:
        out_ref[:, :da] = x[:, :da]
        out_ref[:, da:d] = y1
    else:
        out_ref[:, :out_dim] = y1
        out_ref[:, out_dim:2 * out_dim] = x[:, da:d]
        if da > out_dim:                              # odd d: one wrap-around column
            out_ref[:, 2 * out_dim:d] = x[:, :da - out_dim]
    out_ref[:, d:] = lp_new


class CouplingLayer:
    """JAX/Pallas port of the PyTorch CouplingLayer ('2D experiments' flow)."""

    def __init__(self, d, intermediate_dim=64, swap=False, nonlinearity='ReLu',
                 key=jax.random.PRNGKey(1234), batch_tile=4096):
        self.d_total = d
        self.d = d - d // 2            # size of the conditioning part
        self.out_dim = d - self.d      # size of the transformed part
        self.swap = swap
        self.nonlinearity = nonlinearity
        # Target rows per grid step. Large tiles amortize the ~0.35 us/step overhead;
        # even at 4096 rows the live VMEM footprint is only a few MiB on every
        # generation (v5e/v6e 128 MiB, v7x 64 MiB).
        self.batch_tile = batch_tile

        H = intermediate_dim
        Hp = _round_up(H, 128)         # lane/MXU-aligned hidden dim (zero-padded)

        k1, k2, k3, k4, k5, k6 = jax.random.split(key, 6)
        # Deterministic synthetic init; weights stored transposed as (in, out) so the
        # kernel computes x @ W + b. Padding rows/cols are exactly zero -> exact math.
        w1 = 0.3 * jax.random.normal(k1, (self.d, H), jnp.float32)
        b1 = 0.1 * jax.random.normal(k2, (1, H), jnp.float32)
        w2 = 0.3 * jax.random.normal(k3, (H, H), jnp.float32)
        b2 = 0.1 * jax.random.normal(k4, (1, H), jnp.float32)
        w3 = 0.3 * jax.random.normal(k5, (H, 2 * self.out_dim), jnp.float32)
        b3 = 0.1 * jax.random.normal(k6, (1, 2 * self.out_dim), jnp.float32)

        # w1 stays f32 (used on the VPU); w2/w3 are the MXU operands -> bf16 params.
        self.w1 = jnp.pad(w1, ((0, 0), (0, Hp - H)))
        self.b1 = jnp.pad(b1, ((0, 0), (0, Hp - H)))
        self.w2 = jnp.pad(w2, ((0, Hp - H), (0, Hp - H))).astype(jnp.bfloat16)
        self.b2 = jnp.pad(b2, ((0, 0), (0, Hp - H)))
        self.w3 = jnp.pad(w3, ((0, Hp - H), (0, 0))).astype(jnp.bfloat16)  # [scale|shift]
        self.b3 = b3

    def _pick_tile(self, B):
        if B <= 16:
            return B  # single block whose dims equal the array dims (always legal)
        # Cap the tile so the batch grid has >= 2 steps: v7x has 2 TensorCores and the
        # ("parallel",) axis only shards if there is more than one grid step.
        # Multiple of 8 keeps the sublane constraint satisfied for the ragged case.
        return min(self.batch_tile, _round_up(pl.cdiv(B, 2), 8))

    def _call_kernel(self, x, lp, reverse):
        B, d = x.shape
        TB = self._pick_tile(B)
        grid = (pl.cdiv(B, TB),)       # ragged final block: reads padded, writes masked

        kernel = functools.partial(
            _coupling_kernel, reverse, self.swap, self.nonlinearity,
            self.d, self.out_dim)

        def const_spec(arr):
            # Full-array block with a constant index_map: fetched once, VMEM-resident.
            return pl.BlockSpec(arr.shape, lambda i: (0, 0))

        return pl.pallas_call(
            kernel,
            out_shape=jax.ShapeDtypeStruct((B, d + 1), jnp.float32),
            grid=grid,
            in_specs=[
                pl.BlockSpec((TB, d), lambda i: (i, 0)),   # x tile
                pl.BlockSpec((TB, 1), lambda i: (i, 0)),   # logpx tile
                const_spec(self.w1), const_spec(self.b1),
                const_spec(self.w2), const_spec(self.b2),
                const_spec(self.w3), const_spec(self.b3),
            ],
            out_specs=pl.BlockSpec((TB, d + 1), lambda i: (i, 0)),
            compiler_params=pltpu.CompilerParams(
                dimension_semantics=("parallel",),
                # Footprint is ~few MiB even at TB=4096; raise toward 64-128 MiB only
                # if batch_tile is pushed to 8k-16k on v5e/v6e (keep headroom on v7x).
                vmem_limit_bytes=32 * 1024 * 1024,
            ),
        )(x, lp, self.w1, self.b1, self.w2, self.b2, self.w3, self.b3)

    def forward(self, x, logpx=None, reverse=False, return_packed=False):
        B, d = x.shape
        x = x.astype(jnp.float32)
        lp = (logpx if logpx is not None else jnp.zeros((B, 1), jnp.float32))
        lp = lp.astype(jnp.float32)

        packed = self._call_kernel(x, lp, reverse)
        if return_packed:
            # For chaining coupling layers without per-layer slice/concat HBM passes.
            return packed
        y = packed[:, :d]
        lpo = packed[:, d:]
        if logpx is None:
            return y
        return y, lpo


def _reference_forward(layer, x, logpx, reverse=False):
    """Pure-JAX reference mirroring the PyTorch computation graph.

    Precision mirrors the kernel (per the perf review): layer 1 in f32 as broadcast
    FMAs, layers 2/3 with bf16 operands and f32 accumulation.
    """
    da = layer.d
    if layer.swap:
        x = jnp.concatenate([x[:, da:], x[:, :da]], axis=1)
    act = (lambda v: jnp.maximum(v, 0.0)) if layer.nonlinearity == 'ReLu' else jnp.tanh
    out_dim = x.shape[1] - da
    xa = x[:, :da]

    h = layer.b1
    for k in range(da):
        h = h + xa[:, k:k + 1] * layer.w1[k:k + 1, :]
    h = act(h)
    h = act(jnp.dot(h.astype(jnp.bfloat16), layer.w2,
                    preferred_element_type=jnp.float32) + layer.b2)
    s_t = jnp.dot(h.astype(jnp.bfloat16), layer.w3,
                  preferred_element_type=jnp.float32) + layer.b3

    scale = jax.nn.sigmoid(s_t[:, :out_dim]) + 0.01
    shift = s_t[:, out_dim:]
    logdetjac = jnp.sum(jnp.log(scale), axis=1, keepdims=True)
    if not reverse:
        y1 = x[:, da:] * scale + shift
        delta = logdetjac
    else:
        y1 = (x[:, da:] - shift) / scale
        delta = -logdetjac
    y = (jnp.concatenate([x[:, :da], y1], axis=1) if not layer.swap
         else jnp.concatenate([y1, x[:, :da]], axis=1))
    return y, logpx + delta


if __name__ == "__main__":
    key = jax.random.PRNGKey(0)
    kx, klp, kx2, klp2 = jax.random.split(key, 4)

    # Tolerances are loosened because the kernel (and matching reference) use bf16
    # MXU operands with f32 accumulation, per the performance review.
    ATOL, RTOL = 5e-2, 1e-2

    # --- small demo: even d, ReLU, no swap, B=2 -> single whole-array block ---
    B, d = 2, 4
    x = jax.random.normal(kx, (B, d), jnp.float32)
    logpx = jax.random.normal(klp, (B, 1), jnp.float32)
    layer = CouplingLayer(d, intermediate_dim=64, swap=False, nonlinearity='ReLu')

    y, lp_out = layer.forward(x, logpx=logpx, reverse=False)
    jax.block_until_ready((y, lp_out))
    y_ref, lp_ref = _reference_forward(layer, x, logpx, reverse=False)
    assert jnp.allclose(y, y_ref, atol=ATOL, rtol=RTOL)
    assert jnp.allclose(lp_out, lp_ref, atol=ATOL, rtol=RTOL)

    y_rev, lp_rev = layer.forward(x, logpx=logpx, reverse=True)
    jax.block_until_ready((y_rev, lp_rev))
    y_rev_ref, lp_rev_ref = _reference_forward(layer, x, logpx, reverse=True)
    assert jnp.allclose(y_rev, y_rev_ref, atol=ATOL, rtol=RTOL)
    assert jnp.allclose(lp_rev, lp_rev_ref, atol=ATOL, rtol=RTOL)

    # logpx=None path returns just y
    y_only = layer.forward(x, logpx=None, reverse=False)
    jax.block_until_ready(y_only)
    assert jnp.allclose(y_only, y_ref, atol=ATOL, rtol=RTOL)

    # --- larger batch: odd d, Tanh, swap=True, B=612 -> 2-step grid with a ragged
    # final block (exercises masked writeback, in-kernel swap, no wrapper pad) ---
    B2, d2 = 612, 5
    x2 = jax.random.normal(kx2, (B2, d2), jnp.float32)
    logpx2 = jax.random.normal(klp2, (B2, 1), jnp.float32)
    layer2 = CouplingLayer(d2, intermediate_dim=64, swap=True, nonlinearity='Tanh')

    y2, lp2 = layer2.forward(x2, logpx=logpx2, reverse=False)
    jax.block_until_ready((y2, lp2))
    y2_ref, lp2_ref = _reference_forward(layer2, x2, logpx2, reverse=False)
    assert jnp.allclose(y2, y2_ref, atol=ATOL, rtol=RTOL)
    assert jnp.allclose(lp2, lp2_ref, atol=ATOL, rtol=RTOL)

    y2r, lp2r = layer2.forward(x2, logpx=logpx2, reverse=True)
    jax.block_until_ready((y2r, lp2r))
    y2r_ref, lp2r_ref = _reference_forward(layer2, x2, logpx2, reverse=True)
    assert jnp.allclose(y2r, y2r_ref, atol=ATOL, rtol=RTOL)
    assert jnp.allclose(lp2r, lp2r_ref, atol=ATOL, rtol=RTOL)

    print("KERNEL_OK")
</pallas_src>

<mosaic_0001>
module attributes {stable_mosaic.version = 11 : i64} {
  func.func @_coupling_kernel(%arg0: i32, %arg1: memref<2x4xf32, #tpu.memory_space<vmem>>, %arg2: memref<2x1xf32, #tpu.memory_space<vmem>>, %arg3: memref<2x128xf32, #tpu.memory_space<vmem>>, %arg4: memref<1x128xf32, #tpu.memory_space<vmem>>, %arg5: memref<128x128xbf16, #tpu.memory_space<vmem>>, %arg6: memref<1x128xf32, #tpu.memory_space<vmem>>, %arg7: memref<128x4xbf16, #tpu.memory_space<vmem>>, %arg8: memref<1x4xf32, #tpu.memory_space<vmem>>, %arg9: memref<2x5xf32, #tpu.memory_space<vmem>>) attributes {dimension_semantics = [#tpu.dimension_semantics<parallel>], iteration_bounds = array<i64: 1>, scalar_prefetch = 0 : i64, scratch_operands = 0 : i64, tpu.core_type = #tpu.core_type<tc>, window_params = [{transform_indices = @transform_0, window_bounds = array<i64: 2, 4>}, {transform_indices = @transform_1, window_bounds = array<i64: 2, 1>}, {pipeline_mode = #tpu.pipeline_mode<synchronous>, transform_indices = @transform_2, window_bounds = array<i64: 2, 128>}, {pipeline_mode = #tpu.pipeline_mode<synchronous>, transform_indices = @transform_3, window_bounds = array<i64: 1, 128>}, {pipeline_mode = #tpu.pipeline_mode<synchronous>, transform_indices = @transform_4, window_bounds = array<i64: 128, 128>}, {pipeline_mode = #tpu.pipeline_mode<synchronous>, transform_indices = @transform_5, window_bounds = array<i64: 1, 128>}, {pipeline_mode = #tpu.pipeline_mode<synchronous>, transform_indices = @transform_6, window_bounds = array<i64: 128, 4>}, {pipeline_mode = #tpu.pipeline_mode<synchronous>, transform_indices = @transform_7, window_bounds = array<i64: 1, 4>}, {transform_indices = @transform_8, window_bounds = array<i64: 2, 5>}]} {
    %c0 = arith.constant 0 : index
    %c0_0 = arith.constant 0 : index
    %0 = vector.load %arg1[%c0, %c0_0] : memref<2x4xf32, #tpu.memory_space<vmem>>, vector<2x4xf32>
    %1 = vector.extract_strided_slice %0 {offsets = [0, 2], sizes = [2, 2], strides = [1, 1]} : vector<2x4xf32> to vector<2x2xf32>
    %c0_1 = arith.constant 0 : index
    %c0_2 = arith.constant 0 : index
    %2 = vector.load %arg4[%c0_1, %c0_2] : memref<1x128xf32, #tpu.memory_space<vmem>>, vector<1x128xf32>
    %3 = vector.extract_strided_slice %0 {offsets = [0, 0], sizes = [2, 1], strides = [1, 1]} : vector<2x4xf32> to vector<2x1xf32>
    %c0_3 = arith.constant 0 : index
    %c0_4 = arith.constant 0 : index
    %4 = vector.load %arg3[%c0_3, %c0_4] : memref<2x128xf32, #tpu.memory_space<vmem>>, vector<1x128xf32>
    %5 = vector.broadcast %3 : vector<2x1xf32> to vector<2x128xf32>
    %6 = vector.broadcast %4 : vector<1x128xf32> to vector<2x128xf32>
    %7 = arith.mulf %5, %6 : vector<2x128xf32>
    %8 = vector.broadcast %2 : vector<1x128xf32> to vector<2x128xf32>
    %9 = arith.addf %8, %7 : vector<2x128xf32>
    %10 = vector.extract_strided_slice %0 {offsets = [0, 1], sizes = [2, 1], strides = [1, 1]} : vector<2x4xf32> to vector<2x1xf32>
    %c1 = arith.constant 1 : index
    %c0_5 = arith.constant 0 : index
    %11 = vector.load %arg3[%c1, %c0_5] : memref<2x128xf32, #tpu.memory_space<vmem>>, vector<1x128xf32>
    %12 = vector.broadcast %10 : vector<2x1xf32> to vector<2x128xf32>
    %13 = vector.broadcast %11 : vector<1x128xf32> to vector<2x128xf32>
    %14 = arith.mulf %12, %13 : vector<2x128xf32>
    %15 = arith.addf %9, %14 : vector<2x128xf32>
    %cst = arith.constant 0.000000e+00 : f32
    %16 = vector.broadcast %cst : f32 to vector<2x128xf32>
    %17 = arith.maximumf %15, %16 : vector<2x128xf32>
    %18 = arith.truncf %17 : vector<2x128xf32> to vector<2x128xbf16>
    %c0_6 = arith.constant 0 : index
    %c0_7 = arith.constant 0 : index
    %19 = vector.load %arg5[%c0_6, %c0_7] : memref<128x128xbf16, #tpu.memory_space<vmem>>, vector<128x128xbf16>
    %cst_8 = arith.constant dense<0.000000e+00> : vector<2x128xf32>
    %20 = tpu.matmul %18, %19, %cst_8 {dimension_numbers = #tpu.dot_dimension_numbers<[1], [0], [0], [1], [0, 0, 1, 1], [], []>} : vector<2x128xbf16>, vector<128x128xbf16>, vector<2x128xf32> -> vector<2x128xf32>
    %c0_9 = arith.constant 0 : index
    %c0_10 = arith.constant 0 : index
    %21 = vector.load %arg6[%c0_9, %c0_10] : memref<1x128xf32, #tpu.memory_space<vmem>>, vector<1x128xf32>
    %22 = vector.broadcast %21 : vector<1x128xf32> to vector<2x128xf32>
    %23 = arith.addf %20, %22 : vector<2x128xf32>
    %cst_11 = arith.constant 0.000000e+00 : f32
    %24 = vector.broadcast %cst_11 : f32 to vector<2x128xf32>
    %25 = arith.maximumf %23, %24 : vector<2x128xf32>
    %26 = arith.truncf %25 : vector<2x128xf32> to vector<2x128xbf16>
    %c0_12 = arith.constant 0 : index
    %c0_13 = arith.constant 0 : index
    %27 = vector.load %arg7[%c0_12, %c0_13] : memref<128x4xbf16, #tpu.memory_space<vmem>>, vector<128x4xbf16>
    %cst_14 = arith.constant dense<0.000000e+00> : vector<2x4xf32>
    %28 = tpu.matmul %26, %27, %cst_14 {dimension_numbers = #tpu.dot_dimension_numbers<[1], [0], [0], [1], [0, 0, 1, 1], [], []>} : vector<2x128xbf16>, vector<128x4xbf16>, vector<2x4xf32> -> vector<2x4xf32>
    %c0_15 = arith.constant 0 : index
    %c0_16 = arith.constant 0 : index
    %29 = vector.load %arg8[%c0_15, %c0_16] : memref<1x4xf32, #tpu.memory_space<vmem>>, vector<1x4xf32>
    %30 = vector.broadcast %29 : vector<1x4xf32> to vector<2x4xf32>
    %31 = arith.addf %28, %30 : vector<2x4xf32>
    %32 = vector.extract_strided_slice %31 {offsets = [0, 0], sizes = [2, 2], strides = [1, 1]} : vector<2x4xf32> to vector<2x2xf32>
    %33 = arith.negf %32 : vector<2x2xf32>
    %34 = math.exp %33 : vector<2x2xf32>
    %cst_17 = arith.constant 1.000000e+00 : f32
    %35 = vector.broadcast %cst_17 : f32 to vector<2x2xf32>
    %36 = arith.addf %35, %34 : vector<2x2xf32>
    %37 = arith.divf %35, %36 : vector<2x2xf32>
    %cst_18 = arith.constant 0.00999999977 : f32
    %38 = vector.broadcast %cst_18 : f32 to vector<2x2xf32>
    %39 = arith.addf %37, %38 : vector<2x2xf32>
    %40 = vector.extract_strided_slice %31 {offsets = [0, 2], sizes = [2, 2], strides = [1, 1]} : vector<2x4xf32> to vector<2x2xf32>
    %41 = math.log %39 : vector<2x2xf32>
    %cst_19 = arith.constant dense<0.000000e+00> : vector<2xf32>
    %42 = vector.multi_reduction <add>, %41, %cst_19 [1] : vector<2x2xf32> to vector<2xf32>
    %43 = vector.shape_cast %42 : vector<2xf32> to vector<2x1xf32>
    %44 = arith.mulf %1, %39 : vector<2x2xf32>
    %45 = arith.addf %44, %40 : vector<2x2xf32>
    %c0_20 = arith.constant 0 : index
    %c0_21 = arith.constant 0 : index
    %46 = vector.load %arg2[%c0_20, %c0_21] : memref<2x1xf32, #tpu.memory_space<vmem>>, vector<2x1xf32>
    %47 = arith.addf %46, %43 : vector<2x1xf32>
    %48 = vector.extract_strided_slice %0 {offsets = [0, 0], sizes = [2, 2], strides = [1, 1]} : vector<2x4xf32> to vector<2x2xf32>
    %c0_22 = arith.constant 0 : index
    %c0_23 = arith.constant 0 : index
    %49 = vector.load %arg9[%c0_22, %c0_23] : memref<2x5xf32, #tpu.memory_space<vmem>>, vector<2x2xf32>
    tpu.vector_store %arg9[%c0_22, %c0_23], %48 {strides = array<i32>} : memref<2x5xf32, #tpu.memory_space<vmem>>, vector<2x2xf32>,
    %c0_24 = arith.constant 0 : index
    %c2 = arith.constant 2 : index
    %50 = vector.load %arg9[%c0_24, %c2] : memref<2x5xf32, #tpu.memory_space<vmem>>, vector<2x2xf32>
    tpu.vector_store %arg9[%c0_24, %c2], %45 {strides = array<i32>} : memref<2x5xf32, #tpu.memory_space<vmem>>, vector<2x2xf32>,
    %c0_25 = arith.constant 0 : index
    %c4 = arith.constant 4 : index
    %51 = vector.load %arg9[%c0_25, %c4] : memref<2x5xf32, #tpu.memory_space<vmem>>, vector<2x1xf32>
    tpu.vector_store %arg9[%c0_25, %c4], %47 {strides = array<i32>} : memref<2x5xf32, #tpu.memory_space<vmem>>, vector<2x1xf32>,
    return
  }
  func.func @transform_0(%arg0: i32) -> (i32, i32) {
    %c0_i32 = arith.constant 0 : i32
    %c0_i32_0 = arith.constant 0 : i32
    return %arg0, %c0_i32 : i32, i32
  }
  func.func @transform_1(%arg0: i32) -> (i32, i32) {
    %c0_i32 = arith.constant 0 : i32
    %c0_i32_0 = arith.constant 0 : i32
    return %arg0, %c0_i32 : i32, i32
  }
  func.func @transform_2(%arg0: i32) -> (i32, i32) {
    %c0_i32 = arith.constant 0 : i32
    %c0_i32_0 = arith.constant 0 : i32
    %c0_i32_1 = arith.constant 0 : i32
    return %c0_i32, %c0_i32_0 : i32, i32
  }
  func.func @transform_3(%arg0: i32) -> (i32, i32) {
    %c0_i32 = arith.constant 0 : i32
    %c0_i32_0 = arith.constant 0 : i32
    %c0_i32_1 = arith.constant 0 : i32
    return %c0_i32, %c0_i32_0 : i32, i32
  }
  func.func @transform_4(%arg0: i32) -> (i32, i32) {
    %c0_i32 = arith.constant 0 : i32
    %c0_i32_0 = arith.constant 0 : i32
    %c0_i32_1 = arith.constant 0 : i32
    return %c0_i32, %c0_i32_0 : i32, i32
  }
  func.func @transform_5(%arg0: i32) -> (i32, i32) {
    %c0_i32 = arith.constant 0 : i32
    %c0_i32_0 = arith.constant 0 : i32
    %c0_i32_1 = arith.constant 0 : i32
    return %c0_i32, %c0_i32_0 : i32, i32
  }
  func.func @transform_6(%arg0: i32) -> (i32, i32) {
    %c0_i32 = arith.constant 0 : i32
    %c0_i32_0 = arith.constant 0 : i32
    %c0_i32_1 = arith.constant 0 : i32
    return %c0_i32, %c0_i32_0 : i32, i32
  }
  func.func @transform_7(%arg0: i32) -> (i32, i32) {
    %c0_i32 = arith.constant 0 : i32
    %c0_i32_0 = arith.constant 0 : i32
    %c0_i32_1 = arith.constant 0 : i32
    return %c0_i32, %c0_i32_0 : i32, i32
  }
  func.func @transform_8(%arg0: i32) -> (i32, i32) {
    %c0_i32 = arith.constant 0 : i32
    %c0_i32_0 = arith.constant 0 : i32
    return %arg0, %c0_i32 : i32, i32
  }
}

</mosaic_0001>

<bundles_post_ra>
// kernel: tpu_custom_call.1
= control target key start
LH: loop header
LB: loop body
LE: loop exit
PB: predicated region body
PF: predicated region fallthrough
CT: control target
= control target key end

     0   :  { %v465_v2 = vmov 0   ;;  %v466_v3 = vmov 0.0   ;;  %v467_v5 = vmov 1   ;;  %vm468_vm0 = vmmov 0   ;;  %s615_s0 = inlined_call_operand.vmem [shape: f32[2,4], index: 0, kind: input, shape index: {}]   ;;  %s616_s1 = inlined_call_operand.vmem [shape: f32[2,1], index: 1, kind: input, shape index: {}]   ;;  %s617_s2 = inlined_call_operand.vmem [shape: f32[2,128], index: 2, kind: input, shape index: {}]   ;;  %s618_s3 = inlined_call_operand.vmem [shape: f32[1,128], index: 3, kind: input, shape index: {}]   ;;  %s619_s4 = inlined_call_operand.vmem [shape: bf16[128,128], index: 4, kind: input, shape index: {}]   ;;  %s620_s5 = inlined_call_operand.vmem [shape: f32[1,128], index: 5, kind: input, shape index: {}]   ;;  %s621_s6 = inlined_call_operand.vmem [shape: bf16[128,4], index: 6, kind: input, shape index: {}]   ;;  %s622_s7 = inlined_call_operand.vmem [shape: f32[1,4], index: 7, kind: input, shape index: {}]   ;;  %s623_s8 = inlined_call_operand.hbm [shape: f32[2,5], index: 8, kind: output, shape index: {}]  }
   0x1   :  { %v520_v0 = vld [vmem:[%s615_s0] sm:$0x3]  ;;  %v421_v1 = vld [vmem:[%s619_s4 + $0x38] sm:$0xff]   ;;  %419 = vset.pattern.permute.xlu0 %v465_v2  ;;  %372 = vmatprep.subr.bf16.mxu0 %v466_v3  ;;  %v422_v4 = vld [vmem:[%s619_s4 + $0x30] sm:$0xff]  }
   0x2   :  { %36 = vperm.xlu0 %419, %v520_v0   ;;  %373 = vmatpush3.bf16.msra.mxu0 %v421_v1  ;;  %v423_v6 = vld [vmem:[%s619_s4 + $0x28] sm:$0xff]   ;;  %v424_v7 = vld [vmem:[%s619_s4 + $0x20] sm:$0xff]   ;;  %v429_v8 = vld [vmem:[%s621_s6 + $0x38] sm:$0xff]  }
   0x3   :  { %374 = vmatprep.subr.bf16.mxu0 %v466_v3  ;;  %392 = vmatprep.subr.bf16.mxu1 %v466_v3  ;;  %v430_v9 = vld [vmem:[%s621_s6 + $0x30] sm:$0xff]   ;;  %v425_v10 = vld [vmem:[%s619_s4 + $0x18] sm:$0xff]   ;;  %v431_v11 = vld [vmem:[%s621_s6 + $0x28] sm:$0xff]  }
   0x4   :  { %388 = vmatprep.mubr.msk.bf16.mxu0 %vm468_vm0, %v466_v3  ;;  %408 = vmatprep.mubr.msk.bf16.mxu1 %vm468_vm0, %v466_v3 }
   0x5   :  { %393 = vmatpush3.bf16.msra.mxu1 %v429_v8 }
   0x6   :  { %420 = vset.pattern.permute.xlu0 %v467_v5  ;;  %375 = vmatpush3.bf16.msra.mxu0 %v422_v4 }
   0x7   :  { %53 = vperm.xlu0 %420, %v520_v0   ;;  %376 = vmatprep.subr.bf16.mxu0 %v466_v3 }
   0x8   :  { %394 = vmatprep.subr.bf16.mxu1 %v466_v3 }
   0x9   :  { %395 = vmatpush3.bf16.msra.mxu1 %v430_v9 }
   0xa   :  { %377 = vmatpush3.bf16.msra.mxu0 %v423_v6 }
   0xb   :  { %378 = vmatprep.subr.bf16.mxu0 %v466_v3 }
   0xe   :  { %379 = vmatpush3.bf16.msra.mxu0 %v424_v7 }
   0xf   :  { %380 = vmatprep.subr.bf16.mxu0 %v466_v3 }
  0x10   :  { %13 = vsyncpa [#allocation3], 0  ;;  %v426_v12 = vld [vmem:[%s619_s4 + $0x10] sm:$0xff]   ;;  %396 = vmatprep.subr.bf16.mxu1 %v466_v3  ;;  %v432_v13 = vld [vmem:[%s621_s6 + $0x20] sm:$0xff]   ;;  %vm297_vm1 = vcmask 9216   ;;  %s470_s22 = smov 4  }
  0x11   :  { %397 = vmatpush3.bf16.msra.mxu1 %v431_v11  ;;  %v427_v14 = vld [vmem:[%s619_s4 + $0x8] sm:$0xff]   ;;  %v433_v15 = vld [vmem:[%s621_s6 + $0x18] sm:$0xff]   ;;  %v428_v16 = vld [vmem:[%s619_s4] sm:$0xff]   ;;  %309 = vst.msk [vmem:[#allocation2] sm:$0x3] %vm297_vm1, %v520_v0  ;;  %vm310_vm2 = vcmask 25616  }
  0x12   :  { %381 = vmatpush3.bf16.msra.mxu0 %v425_v10  ;;  %398 = vmatprep.subr.bf16.mxu1 %v466_v3  ;;  %v434_v17 = vld [vmem:[%s621_s6 + $0x10] sm:$0xff]   ;;  %v332_v18 = vld [vmem:[%s617_s2] ss:$0 sm:$0xff]  ;;  %v334_v22 = vld [vmem:[%s617_s2 + $0x1] ss:$0 sm:$0xff]  ;;  %s471_s23 = smov [#allocation2]  }
  0x13   :  { %382 = vmatprep.subr.bf16.mxu0 %v466_v3  ;;  %v333_v21 = vld [vmem:[%s618_s3] ss:$0 sm:$0xff]  ;;  %v435_v29 = vld [vmem:[%s621_s6 + $0x8] sm:$0xff]   ;;  %s324_s24 = sshll.u32 %s471_s23, 4  ;;  %vm316_vm3 = vcmask 33824   ;;  %s325_s24 = int_to_ptr.vmem [resolvable:$true] %s324_s24 }
  0x14   :  { %v436_v30 = vld [vmem:[%s621_s6] sm:$0xff]   ;;  %s443_s25 = scalar_lea.vmem %s325_s24, 32  ;;  %p448_p1 = scmp.lt.s32.totalorder %s325_s24, %s325_s24 }
  0x15   :  { %399 = vmatpush3.bf16.msra.mxu1 %v432_v13  ;;  %v335_v31 = vld [vmem:[%s620_s5] ss:$0 sm:$0xff]  ;;  %s469_s5 = smov 2   ;;  %p444_p0 = scmp.ne.s32.totalorder %s325_s24, %s443_s25 }
  0x16   :  { %383 = vmatpush3.bf16.msra.mxu0 %v426_v12  ;;  %400 = vmatprep.subr.bf16.mxu1 %v466_v3  ;;  %v344_v39 = vld [vmem:[%s622_s7] ss:$0 sm:$0xff]  ;;  %p449_p2 = scmp.lt.s32.totalorder %s443_s25, %s443_s25 }
  0x17   :  { %384 = vmatprep.subr.bf16.mxu0 %v466_v3  ;;  %v307_v53 = vld [vmem:[%s616_s1] sm:$0x3] }
  0x18   :  { %p450_p3 = por %p449_p2, %p448_p1 }
  0x19   :  { %401 = vmatpush3.bf16.msra.mxu1 %v433_v15 }
  0x1a   :  { %385 = vmatpush3.bf16.msra.mxu0 %v427_v14  ;;  %402 = vmatprep.subr.bf16.mxu1 %v466_v3  ;;  %p451_p4 = pnand %p450_p3, %p444_p0 }
  0x1b   :  { %386 = vmatprep.subr.bf16.mxu0 %v466_v3 }
  0x1d   :  { %403 = vmatpush3.bf16.msra.mxu1 %v434_v17 }
  0x1e   :  { %387 = vmatpush3.bf16.msra.mxu0 %v428_v16  ;;  %404 = vmatprep.subr.bf16.mxu1 %v466_v3 }
  0x21   :  { %405 = vmatpush3.bf16.msra.mxu1 %v435_v29 }
  0x22   :  { %406 = vmatprep.subr.bf16.mxu1 %v466_v3 }
  0x25   :  { %407 = vmatpush3.bf16.msra.mxu1 %v436_v30 }
  0x7d   :  { %v37_v19 = vpop.permute.xlu0 %36 }
  0x7e   :  { %v43_v20 = vmul.f32 %v332_v18, %v37_v19 }
  0x80   :  { %v50_v24 = vadd.f32 %v333_v21, %v43_v20 }
  0x82   :  { %v54_v23 = vpop.permute.xlu0 %53 }
  0x83   :  { %v60_v25 = vmul.f32 %v334_v22, %v54_v23 }
  0x85   :  { %v61_v26 = vadd.f32 %v60_v25, %v50_v24 }
  0x87   :  { %v62_v27 = vmax.f32 %v61_v26, 0.0 }
  0x89   :  { %v63_v28 = vpack.c.bf16 %v62_v27, %v62_v27 }
  0x8b   :  { %389 = vmatmul.mubr.bf16.vlgmr.msra.gmra.mxu0 %v63_v28 }
 0x14b   :  { %v169_v32 = vpop.f32.mrf.mxu0 }
 0x14c   :  { %v170_v33 = vadd.f32 %v335_v31, %v169_v32 }
 0x14d   :  { %v390_v34 = vpop.f32.mrf.mxu0 }
 0x14e   :  { %v175_v35 = vmax.f32 %v170_v33, 0.0 }
 0x14f   :  { %v172_v36 = vpop.f32.mrf.mxu0 }
 0x150   :  { %v176_v37 = vpack.c.bf16 %v175_v35, %v175_v35 }
 0x151   :  { %v391_v38 = vpop.f32.mrf.mxu0 }
 0x152   :  { %409 = vmatmul.mubr.bf16.vlgmr.msra.gmra.mxu1 %v176_v37 }
 0x212   :  { %v282_v40 = vpop.f32.mrf.mxu1 }
 0x213   :  { %v283_v41 = vadd.f32 %v344_v39, %v282_v40 }
 0x214   :  { %v410_v42 = vpop.f32.mrf.mxu1 }
 0x215   :  { %v353_v43 = vmul.f32 -1.442695, %v283_v41 }
 0x216   :  { %v285_v44 = vpop.f32.mrf.mxu1 }
 0x217   :  { %437 = vpow2.f32 %v353_v43 }
 0x218   :  { %v411_v45 = vpop.f32.mrf.mxu1 }
 0x224   :  { %v438_v46 = vpop.eup %437 }
 0x225   :  { %v291_v47 = vadd.f32 1.0, %v438_v46 }
 0x227   :  { %439 = vrcp.f32 %v291_v47 }
 0x234   :  { %v440_v48 = vpop.eup %439 }
 0x235   :  { %v294_v49 = vadd.f32 0.01, %v440_v48 }
 0x237   :  { %441 = vlog2.f32 %v294_v49 }
 0x244   :  { %v442_v50 = vpop.eup %441 }
 0x245   :  { %v296_v51 = vmul.f32 0.6931472, %v442_v50 }
 0x247   :  { %v298_v52 = vsel %vm297_vm1, %v296_v51, 0.0 }
 0x248   :  { %299 = vadd.xlane.f32.xlu1 %v298_v52 }
 0x259   :  { %302 = vrot.lane.b32.xlu1 %v294_v49, %s469_s5 }
 0x2d1   :  { %v300_v54 = vpop.xlane.xlu1 %299 }
 0x2d2   :  { %v308_v55 = vadd.f32 %v307_v53, %v300_v54 }
 0x2d4   :  { %313 = vrot.lane.b32.xlu0 %v308_v55, %s470_s22 }
 0x2d5   :  { %v303_v56 = vpop.permute.xlu1 %302 }
 0x2d6   :  { %v305_v57 = vmul.f32 %v303_v56, %v520_v0 }
 0x2d8   :  { %v306_v58 = vadd.f32 %v305_v57, %v283_v41 }
 0x2da   :  { %311 = vst.msk [vmem:[#allocation2] sm:$0x3] %vm310_vm2, %v306_v58 }
 0x346   :  { %v314_v59 = vpop.permute.xlu0 %313 }
 0x347   :  { %317 = vst.msk [vmem:[#allocation2] sm:$0x3] %vm316_vm3, %v314_v59 }
 0x348   :  { %454 = shalt.err (!%p451_p4)
}
 0x349   :  { %327 = dma.vmem_to_hbm [thread:$0]  %s325_s24, 32, %s623_s8, [#allocation3]  }
 0x34a   :  { %463 = dma.done.wait [#allocation3], 32  }
 0x34b   :  { %464 = vsyncadd [#allocation3], 4294967264 }
 0x34c   :  { %331 = vsyncpa [#allocation3], 1 }

</bundles_post_ra>
